<compile_context>
chip_gen: v7x
topology: tpu7x:2x2x1
jax: 0.10.0
libtpu: 0.0.40
codegen_flags: <defaults>
</compile_context>

<pallas_src>
import jax
import jax.numpy as jnp
from jax.experimental import pallas as pl
from jax.experimental.pallas import tpu as pltpu

# Fixed embedding sizes from the module defaults.
ITEM_FEATURE_EMB = 25
ITEM_MOVIEID_EMB = 25
USER_FEATURE_EMB = 50  # must equal ITEM_FEATURE_EMB + ITEM_MOVIEID_EMB

# Fused lane layout of the single (TILE_B, 128) activation:
#   lanes [0, 50)    -> user_embedding
#   lanes [50, 64)   -> zero padding
#   lanes [64, 89)   -> item_feature_embedding
#   lanes [89, 114)  -> item_id_embedding_hidden
#   lanes [114, 128) -> zero padding
_N_PAD = 128
_HALF = 64
_U_OFF = 0
_I_OFF = _HALF
_E_OFF = _HALF + ITEM_FEATURE_EMB

_MAX_TILE_B = 1024  # rows per grid step (multiple of 128, fits VMEM on v5e/v6e/v7x)


def _recommender_kernel(uc_ref, mc_ref, ide_ref, wu_ref, wi_ref, we_ref,
                        b_ref, out_ref):
    # Three matmuls accumulate into disjoint lane ranges of one (TILE_B, 128)
    # f32 tile (padded weight columns are zero).
    pre = jnp.dot(uc_ref[...], wu_ref[...], preferred_element_type=jnp.float32)
    pre = pre + jnp.dot(mc_ref[...], wi_ref[...],
                        preferred_element_type=jnp.float32)
    pre = pre + jnp.dot(ide_ref[...], we_ref[...],
                        preferred_element_type=jnp.float32)
    # Single bias add + single tanh over the full lane-dense tile.
    act = jnp.tanh(pre + b_ref[...])
    # user half (lanes [0,64)) pairs elementwise with the combined item half
    # (lanes [64,128)); padded lanes contribute tanh(0)*tanh(0) = 0.
    u = act[:, :_HALF]
    c = act[:, _HALF:]
    # preds = einsum('ij,ij->i', user_emb, [feat_emb | id_emb_hidden])
    out_ref[0, :] = jnp.sum(u * c, axis=1)


def init_params(key, num_genres, num_movies, user_context_size):
    """Deterministic init matching the PyTorch _init_weights semantics."""
    ks = jax.random.split(key, 7)
    params = {
        # Linear weights ~ N(0, 0.1), stored as [in, out]; biases ~ N(0, 0.1)
        "i_W1": jax.random.normal(ks[0], (num_genres, ITEM_FEATURE_EMB), jnp.float32) * 0.1,
        "i_b1": jax.random.normal(ks[1], (1, ITEM_FEATURE_EMB), jnp.float32) * 0.1,
        "e_W1": jax.random.normal(ks[2], (ITEM_MOVIEID_EMB, ITEM_MOVIEID_EMB), jnp.float32) * 0.1,
        "e_b1": jax.random.normal(ks[3], (1, ITEM_MOVIEID_EMB), jnp.float32) * 0.1,
        "u_W1": jax.random.normal(ks[4], (user_context_size, USER_FEATURE_EMB), jnp.float32) * 0.1,
        "u_b1": jax.random.normal(ks[5], (1, USER_FEATURE_EMB), jnp.float32) * 0.1,
        # Embedding table ~ U(0, 0.1)
        "movie_embedding": jax.random.uniform(
            ks[6], (num_movies, ITEM_MOVIEID_EMB), jnp.float32, 0.0, 0.1),
    }
    return params


def _pad_weights(params):
    """Place the three Linears into disjoint lane ranges of a 128-wide output."""
    ucs = params["u_W1"].shape[0]
    ng = params["i_W1"].shape[0]
    wu = jnp.zeros((ucs, _N_PAD), jnp.float32)
    wu = wu.at[:, _U_OFF:_U_OFF + USER_FEATURE_EMB].set(params["u_W1"])
    wi = jnp.zeros((ng, _N_PAD), jnp.float32)
    wi = wi.at[:, _I_OFF:_I_OFF + ITEM_FEATURE_EMB].set(params["i_W1"])
    we = jnp.zeros((ITEM_MOVIEID_EMB, _N_PAD), jnp.float32)
    we = we.at[:, _E_OFF:_E_OFF + ITEM_MOVIEID_EMB].set(params["e_W1"])
    b = jnp.zeros((1, _N_PAD), jnp.float32)
    b = b.at[:, _U_OFF:_U_OFF + USER_FEATURE_EMB].set(params["u_b1"])
    b = b.at[:, _I_OFF:_I_OFF + ITEM_FEATURE_EMB].set(params["i_b1"])
    b = b.at[:, _E_OFF:_E_OFF + ITEM_MOVIEID_EMB].set(params["e_b1"])
    return wu, wi, we, b


def film_recommender_forward(params, user_contexts, movie_contexts, movie_ids):
    B = user_contexts.shape[0]
    ucs = user_contexts.shape[1]
    ng = movie_contexts.shape[1]

    # TODO(synk): fuse the embedding gather into the kernel (scalar-prefetched
    # movie_ids + in-kernel gather) to avoid round-tripping id_emb through HBM.
    id_emb = jnp.take(params["movie_embedding"], movie_ids, axis=0).astype(jnp.float32)

    wu, wi, we, b = _pad_weights(params)

    # Batch tiling: lane-aligned tiles, padded batch, tail sliced off below.
    tile_b = min(_MAX_TILE_B, pl.cdiv(B, 128) * 128)
    b_pad = pl.cdiv(B, tile_b) * tile_b
    num_tiles = b_pad // tile_b

    user_contexts = user_contexts.astype(jnp.float32)
    movie_contexts = movie_contexts.astype(jnp.float32)
    if b_pad != B:
        pad = b_pad - B
        user_contexts = jnp.pad(user_contexts, ((0, pad), (0, 0)))
        movie_contexts = jnp.pad(movie_contexts, ((0, pad), (0, 0)))
        id_emb = jnp.pad(id_emb, ((0, pad), (0, 0)))

    out = pl.pallas_call(
        _recommender_kernel,
        out_shape=jax.ShapeDtypeStruct((num_tiles, tile_b), jnp.float32),
        grid=(num_tiles,),
        in_specs=[
            # Streamed activations: one batch tile per grid step.
            pl.BlockSpec((tile_b, ucs), lambda i: (i, 0)),
            pl.BlockSpec((tile_b, ng), lambda i: (i, 0)),
            pl.BlockSpec((tile_b, ITEM_MOVIEID_EMB), lambda i: (i, 0)),
            # Weights / bias: DMA'd once, resident across all grid steps.
            pl.BlockSpec((ucs, _N_PAD), lambda i: (0, 0)),
            pl.BlockSpec((ng, _N_PAD), lambda i: (0, 0)),
            pl.BlockSpec((ITEM_MOVIEID_EMB, _N_PAD), lambda i: (0, 0)),
            pl.BlockSpec((1, _N_PAD), lambda i: (0, 0)),
        ],
        out_specs=pl.BlockSpec((1, tile_b), lambda i: (i, 0)),
        compiler_params=pltpu.CompilerParams(
            dimension_semantics=("parallel",),
            vmem_limit_bytes=32 * 1024 * 1024,
        ),
    )(user_contexts, movie_contexts, id_emb, wu, wi, we, b)

    return out.reshape(-1)[:B]  # [B]


def _reference_forward(params, user_contexts, movie_contexts, movie_ids):
    """Pure-JAX reference matching the PyTorch forward."""
    hp = jax.lax.Precision.HIGHEST
    user_emb = jnp.tanh(
        jnp.dot(user_contexts, params["u_W1"], precision=hp) + params["u_b1"])
    feat_emb = jnp.tanh(
        jnp.dot(movie_contexts, params["i_W1"], precision=hp) + params["i_b1"])
    id_emb = jnp.take(params["movie_embedding"], movie_ids, axis=0)
    id_emb_h = jnp.tanh(
        jnp.dot(id_emb, params["e_W1"], precision=hp) + params["e_b1"])
    combined = jnp.concatenate([feat_emb, id_emb_h], axis=1)
    return jnp.einsum("ij,ij->i", user_emb, combined, precision=hp)


if __name__ == "__main__":
    # Small synthetic shapes consistent with the module's forward.
    B = 8
    NUM_GENRES = 4
    NUM_MOVIES = 16
    USER_CONTEXT_SIZE = 20

    key = jax.random.PRNGKey(0)
    k_param, k_uc, k_mc, k_id = jax.random.split(key, 4)

    params = init_params(k_param, NUM_GENRES, NUM_MOVIES, USER_CONTEXT_SIZE)

    user_contexts = jax.random.normal(k_uc, (B, USER_CONTEXT_SIZE), jnp.float32)
    movie_contexts = jax.random.normal(k_mc, (B, NUM_GENRES), jnp.float32)
    movie_ids = jax.random.randint(k_id, (B,), 0, NUM_MOVIES, jnp.int32)

    preds = film_recommender_forward(params, user_contexts, movie_contexts, movie_ids)
    preds = jax.block_until_ready(preds)

    ref = _reference_forward(params, user_contexts, movie_contexts, movie_ids)
    assert preds.shape == (B,)
    assert jnp.allclose(preds, ref, atol=1e-4, rtol=1e-4), (preds, ref)

    print("KERNEL_OK")
</pallas_src>

<mosaic_0001>
module attributes {stable_mosaic.version = 11 : i64} {
  func.func @_recommender_kernel(%arg0: i32, %arg1: memref<128x20xf32, #tpu.memory_space<vmem>>, %arg2: memref<128x4xf32, #tpu.memory_space<vmem>>, %arg3: memref<128x25xf32, #tpu.memory_space<vmem>>, %arg4: memref<20x128xf32, #tpu.memory_space<vmem>>, %arg5: memref<4x128xf32, #tpu.memory_space<vmem>>, %arg6: memref<25x128xf32, #tpu.memory_space<vmem>>, %arg7: memref<1x128xf32, #tpu.memory_space<vmem>>, %arg8: memref<1x128xf32, #tpu.memory_space<vmem>>) attributes {dimension_semantics = [#tpu.dimension_semantics<parallel>], iteration_bounds = array<i64: 1>, scalar_prefetch = 0 : i64, scratch_operands = 0 : i64, tpu.core_type = #tpu.core_type<tc>, window_params = [{transform_indices = @transform_0, window_bounds = array<i64: 128, 20>}, {transform_indices = @transform_1, window_bounds = array<i64: 128, 4>}, {transform_indices = @transform_2, window_bounds = array<i64: 128, 25>}, {pipeline_mode = #tpu.pipeline_mode<synchronous>, transform_indices = @transform_3, window_bounds = array<i64: 20, 128>}, {pipeline_mode = #tpu.pipeline_mode<synchronous>, transform_indices = @transform_4, window_bounds = array<i64: 4, 128>}, {pipeline_mode = #tpu.pipeline_mode<synchronous>, transform_indices = @transform_5, window_bounds = array<i64: 25, 128>}, {pipeline_mode = #tpu.pipeline_mode<synchronous>, transform_indices = @transform_6, window_bounds = array<i64: 1, 128>}, {transform_indices = @transform_7, window_bounds = array<i64: 1, 128>}]} {
    %c0 = arith.constant 0 : index
    %c0_0 = arith.constant 0 : index
    %0 = vector.load %arg1[%c0, %c0_0] : memref<128x20xf32, #tpu.memory_space<vmem>>, vector<128x20xf32>
    %c0_1 = arith.constant 0 : index
    %c0_2 = arith.constant 0 : index
    %1 = vector.load %arg4[%c0_1, %c0_2] : memref<20x128xf32, #tpu.memory_space<vmem>>, vector<20x128xf32>
    %cst = arith.constant dense<0.000000e+00> : vector<128x128xf32>
    %2 = tpu.matmul %0, %1, %cst {dimension_numbers = #tpu.dot_dimension_numbers<[1], [0], [0], [1], [0, 0, 1, 1], [], []>} : vector<128x20xf32>, vector<20x128xf32>, vector<128x128xf32> -> vector<128x128xf32>
    %c0_3 = arith.constant 0 : index
    %c0_4 = arith.constant 0 : index
    %3 = vector.load %arg2[%c0_3, %c0_4] : memref<128x4xf32, #tpu.memory_space<vmem>>, vector<128x4xf32>
    %c0_5 = arith.constant 0 : index
    %c0_6 = arith.constant 0 : index
    %4 = vector.load %arg5[%c0_5, %c0_6] : memref<4x128xf32, #tpu.memory_space<vmem>>, vector<4x128xf32>
    %cst_7 = arith.constant dense<0.000000e+00> : vector<128x128xf32>
    %5 = tpu.matmul %3, %4, %cst_7 {dimension_numbers = #tpu.dot_dimension_numbers<[1], [0], [0], [1], [0, 0, 1, 1], [], []>} : vector<128x4xf32>, vector<4x128xf32>, vector<128x128xf32> -> vector<128x128xf32>
    %6 = arith.addf %2, %5 : vector<128x128xf32>
    %c0_8 = arith.constant 0 : index
    %c0_9 = arith.constant 0 : index
    %7 = vector.load %arg3[%c0_8, %c0_9] : memref<128x25xf32, #tpu.memory_space<vmem>>, vector<128x25xf32>
    %c0_10 = arith.constant 0 : index
    %c0_11 = arith.constant 0 : index
    %8 = vector.load %arg6[%c0_10, %c0_11] : memref<25x128xf32, #tpu.memory_space<vmem>>, vector<25x128xf32>
    %cst_12 = arith.constant dense<0.000000e+00> : vector<128x128xf32>
    %9 = tpu.matmul %7, %8, %cst_12 {dimension_numbers = #tpu.dot_dimension_numbers<[1], [0], [0], [1], [0, 0, 1, 1], [], []>} : vector<128x25xf32>, vector<25x128xf32>, vector<128x128xf32> -> vector<128x128xf32>
    %10 = arith.addf %6, %9 : vector<128x128xf32>
    %c0_13 = arith.constant 0 : index
    %c0_14 = arith.constant 0 : index
    %11 = vector.load %arg7[%c0_13, %c0_14] : memref<1x128xf32, #tpu.memory_space<vmem>>, vector<1x128xf32>
    %12 = vector.broadcast %11 : vector<1x128xf32> to vector<128x128xf32>
    %13 = arith.addf %10, %12 : vector<128x128xf32>
    %14 = math.tanh %13 : vector<128x128xf32>
    %15 = vector.extract_strided_slice %14 {offsets = [0, 0], sizes = [128, 64], strides = [1, 1]} : vector<128x128xf32> to vector<128x64xf32>
    %16 = vector.extract_strided_slice %14 {offsets = [0, 64], sizes = [128, 64], strides = [1, 1]} : vector<128x128xf32> to vector<128x64xf32>
    %17 = arith.mulf %15, %16 : vector<128x64xf32>
    %cst_15 = arith.constant dense<0.000000e+00> : vector<128xf32>
    %18 = vector.multi_reduction <add>, %17, %cst_15 [1] : vector<128x64xf32> to vector<128xf32>
    %c0_16 = arith.constant 0 : index
    %c0_17 = arith.constant 0 : index
    %19 = vector.load %arg8[%c0_16, %c0_17] : memref<1x128xf32, #tpu.memory_space<vmem>>, vector<1x128xf32>
    %20 = vector.shape_cast %19 : vector<1x128xf32> to vector<128xf32>
    %21 = vector.shape_cast %18 : vector<128xf32> to vector<1x128xf32>
    tpu.vector_store %arg8[%c0_16, %c0_17], %21 {strides = array<i32>} : memref<1x128xf32, #tpu.memory_space<vmem>>, vector<1x128xf32>,
    return
  }
  func.func @transform_0(%arg0: i32) -> (i32, i32) {
    %c0_i32 = arith.constant 0 : i32
    %c0_i32_0 = arith.constant 0 : i32
    return %arg0, %c0_i32 : i32, i32
  }
  func.func @transform_1(%arg0: i32) -> (i32, i32) {
    %c0_i32 = arith.constant 0 : i32
    %c0_i32_0 = arith.constant 0 : i32
    return %arg0, %c0_i32 : i32, i32
  }
  func.func @transform_2(%arg0: i32) -> (i32, i32) {
    %c0_i32 = arith.constant 0 : i32
    %c0_i32_0 = arith.constant 0 : i32
    return %arg0, %c0_i32 : i32, i32
  }
  func.func @transform_3(%arg0: i32) -> (i32, i32) {
    %c0_i32 = arith.constant 0 : i32
    %c0_i32_0 = arith.constant 0 : i32
    %c0_i32_1 = arith.constant 0 : i32
    return %c0_i32, %c0_i32_0 : i32, i32
  }
  func.func @transform_4(%arg0: i32) -> (i32, i32) {
    %c0_i32 = arith.constant 0 : i32
    %c0_i32_0 = arith.constant 0 : i32
    %c0_i32_1 = arith.constant 0 : i32
    return %c0_i32, %c0_i32_0 : i32, i32
  }
  func.func @transform_5(%arg0: i32) -> (i32, i32) {
    %c0_i32 = arith.constant 0 : i32
    %c0_i32_0 = arith.constant 0 : i32
    %c0_i32_1 = arith.constant 0 : i32
    return %c0_i32, %c0_i32_0 : i32, i32
  }
  func.func @transform_6(%arg0: i32) -> (i32, i32) {
    %c0_i32 = arith.constant 0 : i32
    %c0_i32_0 = arith.constant 0 : i32
    %c0_i32_1 = arith.constant 0 : i32
    return %c0_i32, %c0_i32_0 : i32, i32
  }
  func.func @transform_7(%arg0: i32) -> (i32, i32) {
    %c0_i32 = arith.constant 0 : i32
    %c0_i32_0 = arith.constant 0 : i32
    return %arg0, %c0_i32 : i32, i32
  }
}

</mosaic_0001>

<bundles_post_ra>
// kernel: tpu_custom_call.1
= control target key start
LH: loop header
LB: loop body
LE: loop exit
PB: predicated region body
PF: predicated region fallthrough
CT: control target
= control target key end

     0   :  { %vm112_vm0 = vcmask 1043456   ;;  %vm63_vm1 = vcmask 31744   ;;  %vm527_vm2 = vcmask 1040384   ;;  %vm1306_vm3 = vmmov 1   ;;  %s1685_s0 = inlined_call_operand.vmem [shape: f32[128,20], index: 0, kind: input, shape index: {}]   ;;  %s1686_s1 = inlined_call_operand.vmem [shape: f32[128,4], index: 1, kind: input, shape index: {}]   ;;  %s1687_s2 = inlined_call_operand.vmem [shape: f32[128,25], index: 2, kind: input, shape index: {}]   ;;  %s1688_s3 = inlined_call_operand.vmem [shape: f32[20,128], index: 3, kind: input, shape index: {}]   ;;  %s1689_s4 = inlined_call_operand.vmem [shape: f32[4,128], index: 4, kind: input, shape index: {}]   ;;  %s1690_s5 = inlined_call_operand.vmem [shape: f32[25,128], index: 5, kind: input, shape index: {}]   ;;  %s1691_s6 = inlined_call_operand.vmem [shape: f32[1,128], index: 6, kind: input, shape index: {}]   ;;  %s1692_s7 = inlined_call_operand.hbm [shape: f32[1,128], index: 7, kind: output, shape index: {}]  }
   0x1   :  { %v62_v0 = vld [vmem:[%s1689_s4] sm:$0xf]  ;;  %v47_v3 = vld [vmem:[%s1686_s1 + $0x8] sm:$0xff]  ;;  %v48_v11 = vld [vmem:[%s1686_s1 + $0x10] sm:$0xff]  ;;  %vm261_vm5 = vcmask 162816   ;;  %vm478_vm6 = vcmask 203776  }
   0x2   :  { %v46_v1 = vld [vmem:[%s1686_s1] sm:$0xff]  ;;  %1111 = vmatprep.subr.msk.mxu0 %vm112_vm0, %v62_v0  ;;  %1213 = vmatprep.subr.msk.mxu1 %vm112_vm0, %v62_v0  ;;  %v55_v4 = vld [vmem:[%s1686_s1 + $0x48] sm:$0xff]  ;;  %v56_v12 = vld [vmem:[%s1686_s1 + $0x50] sm:$0xff] }
   0x3   :  { %v54_v2 = vld [vmem:[%s1686_s1 + $0x40] sm:$0xff]  ;;  %1112 = vmatpush3.msk.msra.mxu0 %vm112_vm0, %v62_v0  ;;  %1214 = vmatpush3.msk.msra.mxu1 %vm112_vm0, %v62_v0  ;;  %v44_v6 = vld [vmem:[%s1688_s3 + $0x8] sm:$0xff]  ;;  %v49_v13 = vld [vmem:[%s1686_s1 + $0x18] sm:$0xff] }
   0x4   :  { %v43_v5 = vld [vmem:[%s1688_s3] sm:$0xff]  ;;  %v475_v8 = vld [vmem:[%s1690_s5 + $0x8] sm:$0xff]  ;;  %1113 = vmatprep.mubr.msk.f32.mxu0 %vm63_vm1, %v46_v1  ;;  %1125 = vmatprep.mubr.msk.f32.mxu1 %vm63_vm1, %v54_v2  ;;  %v57_v14 = vld [vmem:[%s1686_s1 + $0x58] sm:$0xff] }
   0x5   :  { %v474_v7 = vld [vmem:[%s1690_s5] sm:$0xff]  ;;  %v1199_v9 = vpack.c.bf16 %v44_v6, %v43_v5  ;;  %1114 = vmatmul.mubr.msk.f32.vlgmr.msra.gmra.mrb[0].mxu0 %vm63_vm1, %v47_v3  ;;  %1126 = vmatmul.mubr.msk.f32.vlgmr.msra.gmra.mrb[0].mxu1 %vm63_vm1, %v55_v4  ;;  %v476_v17 = vld [vmem:[%s1690_s5 + $0x10] sm:$0xff]  ;;  %v477_v18 = vld [vmem:[%s1690_s5 + $0x18] sm:$0x1] }
   0x6   :  { %v1203_v10 = vpack.c.bf16 %v475_v8, %v474_v7  ;;  %v50_v15 = vld [vmem:[%s1686_s1 + $0x20] sm:$0xff]  ;;  %1116 = vmatprep.mubr.msk.f32.mxu0 %vm63_vm1, %v48_v11  ;;  %1128 = vmatprep.mubr.msk.f32.mxu1 %vm63_vm1, %v56_v12  ;;  %v45_v19 = vld [vmem:[%s1688_s3 + $0x10] sm:$0xf]  ;;  %v1207_v20 = vpack.c.bf16 %v477_v18, %v476_v17  ;;  %vm1208_vm4 = vmpackc.low %vm527_vm2, %vm1306_vm3 }
   0x7   :  { %1200 = vmatprep.subr.bf16.mxu1 %v1199_v9  ;;  %v58_v16 = vld [vmem:[%s1686_s1 + $0x60] sm:$0xff]  ;;  %v51_v21 = vld [vmem:[%s1686_s1 + $0x28] sm:$0xff]  ;;  %v52_v23 = vld [vmem:[%s1686_s1 + $0x30] sm:$0xff] }
   0x8   :  { %1204 = vmatprep.subr.bf16.mxu0 %v1203_v10  ;;  %1202 = vmatpush3.bf16.msra.mxu1 %v1199_v9  ;;  %v59_v22 = vld [vmem:[%s1686_s1 + $0x68] sm:$0xff]  ;;  %v60_v24 = vld [vmem:[%s1686_s1 + $0x70] sm:$0xff]  ;;  %v53_v25 = vld [vmem:[%s1686_s1 + $0x38] sm:$0xff] }
   0x9   :  { %1206 = vmatpush3.bf16.msra.mxu0 %v1203_v10  ;;  %1129 = vmatmul.mubr.msk.f32.gmra.mrb[2].mxu1 %vm63_vm1, %v57_v14  ;;  %v61_v26 = vld [vmem:[%s1686_s1 + $0x78] sm:$0xff]  ;;  %v27_v27 = vld [vmem:[%s1685_s0] sm:$0xff]  ;;  %v28_v29 = vld [vmem:[%s1685_s0 + $0x8] sm:$0xff] }
   0xa   :  { %1117 = vmatmul.mubr.msk.f32.gmra.mrb[2].mxu0 %vm63_vm1, %v49_v13  ;;  %1131 = vmatprep.mubr.msk.f32.mxu1 %vm63_vm1, %v58_v16  ;;  %v458_v28 = vld [vmem:[%s1687_s2] sm:$0xff]  ;;  %v459_v30 = vld [vmem:[%s1687_s2 + $0x8] sm:$0xff]  ;;  %v29_v31 = vld [vmem:[%s1685_s0 + $0x10] sm:$0xff] }
   0xb   :  { %1119 = vmatprep.mubr.msk.f32.mxu0 %vm63_vm1, %v50_v15  ;;  %1141 = vmatprep.subr.msk.mxu1 %vm112_vm0, %v45_v19  ;;  %v460_v32 = vld [vmem:[%s1687_s2 + $0x10] sm:$0xff] }
   0xc   :  { %1209 = vmatprep.subr.msk.bf16.mxu0 %vm1208_vm4, %v1207_v20  ;;  %1142 = vmatpush3.msk.msra.mxu1 %vm112_vm0, %v45_v19 }
   0xd   :  { %1212 = vmatpush3.bf16.msk.msra.mxu0 %vm1208_vm4, %v1207_v20  ;;  %1132 = vmatmul.mubr.msk.f32.gmra.mrb[4].mxu1 %vm63_vm1, %v59_v22 }
   0xe   :  { %1120 = vmatmul.mubr.msk.f32.gmra.mrb[4].mxu0 %vm63_vm1, %v51_v21  ;;  %1134 = vmatprep.mubr.msk.f32.mxu1 %vm63_vm1, %v60_v24 }
   0xf   :  { %1122 = vmatprep.mubr.msk.f32.mxu0 %vm63_vm1, %v52_v23 }
  0x11   :  { %1135 = vmatmul.mubr.msk.f32.gmra.mrb[6].mxu1 %vm63_vm1, %v61_v26 }
  0x12   :  { %1123 = vmatmul.mubr.msk.f32.gmra.mrb[6].mxu0 %vm63_vm1, %v53_v25  ;;  %1143 = vmatprep.mubr.msk.f32.mxu1 %vm261_vm5, %v27_v27 }
  0x13   :  { %1175 = vmatprep.mubr.msk.f32.mxu0 %vm478_vm6, %v458_v28 }
  0x14   :  { %12 = vsyncpa [#allocation3], 0  ;;  %v30_v33 = vld [vmem:[%s1685_s0 + $0x18] sm:$0xff]  ;;  %v31_v35 = vld [vmem:[%s1685_s0 + $0x20] sm:$0xff]  ;;  %vm811_vm7 = vcmask 523264   ;;  %vm887_vm8 = vcmask 130112  }
  0x15   :  { %1144 = vmatmul.mubr.msk.f32.vlgmr.msra.gmra.mrb[8].mxu1 %vm261_vm5, %v28_v29  ;;  %v461_v34 = vld [vmem:[%s1687_s2 + $0x18] sm:$0xff]  ;;  %v462_v36 = vld [vmem:[%s1687_s2 + $0x20] sm:$0xff]  ;;  %v32_v37 = vld [vmem:[%s1685_s0 + $0x28] sm:$0xff]  ;;  %vm894_vm9 = vcmask 195712   ;;  %vm901_vm10 = vcmask 261312   ;;  %vm908_vm11 = vcmask 326912  }
  0x16   :  { %1176 = vmatmul.mubr.msk.f32.vlgmr.msra.gmra.mrb[8].mxu0 %vm478_vm6, %v459_v30  ;;  %1146 = vmatprep.mubr.msk.f32.mxu1 %vm261_vm5, %v29_v31  ;;  %v463_v38 = vld [vmem:[%s1687_s2 + $0x28] sm:$0xff]  ;;  %v33_v39 = vld [vmem:[%s1685_s0 + $0x30] sm:$0xff]  ;;  %v34_v41 = vld [vmem:[%s1685_s0 + $0x38] sm:$0xff]  ;;  %vm915_vm12 = vcmask 392512   ;;  %vm922_vm13 = vcmask 458112   ;;  %vm929_vm14 = vcmask 523712  }
  0x17   :  { %1178 = vmatprep.mubr.msk.f32.mxu0 %vm478_vm6, %v460_v32  ;;  %v464_v40 = vld [vmem:[%s1687_s2 + $0x30] sm:$0xff]  ;;  %v465_v42 = vld [vmem:[%s1687_s2 + $0x38] sm:$0xff]  ;;  %v35_v43 = vld [vmem:[%s1685_s0 + $0x40] sm:$0xff]  ;;  %vm936_vm15 = vcmask 589312   ;;  %vm943_vm0 = vcmask 654912   ;;  %vm950_vm1 = vcmask 720512  }
  0x18   :  { %v466_v44 = vld [vmem:[%s1687_s2 + $0x40] sm:$0xff]  ;;  %v36_v45 = vld [vmem:[%s1685_s0 + $0x48] sm:$0xff]  ;;  %v37_v47 = vld [vmem:[%s1685_s0 + $0x50] sm:$0xff]  ;;  %vm957_vm2 = vcmask 786112   ;;  %vm964_vm3 = vcmask 851712   ;;  %vm971_vm4 = vcmask 917312  }
  0x19   :  { %1147 = vmatmul.mubr.msk.f32.gmra.mrb[10].mxu1 %vm261_vm5, %v30_v33  ;;  %v467_v46 = vld [vmem:[%s1687_s2 + $0x48] sm:$0xff]  ;;  %v468_v48 = vld [vmem:[%s1687_s2 + $0x50] sm:$0xff]  ;;  %v38_v49 = vld [vmem:[%s1685_s0 + $0x58] sm:$0xff]  ;;  %s1308_s8 = smov [#allocation2]  }
  0x1a   :  { %1179 = vmatmul.mubr.msk.f32.gmra.mrb[10].mxu0 %vm478_vm6, %v461_v34  ;;  %1149 = vmatprep.mubr.msk.f32.mxu1 %vm261_vm5, %v31_v35  ;;  %v469_v50 = vld [vmem:[%s1687_s2 + $0x58] sm:$0xff]  ;;  %v39_v51 = vld [vmem:[%s1685_s0 + $0x60] sm:$0xff]  ;;  %v40_v53 = vld [vmem:[%s1685_s0 + $0x68] sm:$0xff]  ;;  %s995_s9 = sshll.u32 %s1308_s8, 4  ;;  %s996_s9 = int_to_ptr.vmem [resolvable:$true] %s995_s9 }
  0x1b   :  { %1181 = vmatprep.mubr.msk.f32.mxu0 %vm478_vm6, %v462_v36  ;;  %v470_v52 = vld [vmem:[%s1687_s2 + $0x60] sm:$0xff]  ;;  %v471_v54 = vld [vmem:[%s1687_s2 + $0x68] sm:$0xff]  ;;  %v41_v55 = vld [vmem:[%s1685_s0 + $0x70] sm:$0xff]  ;;  %s1282_s4 = scalar_lea.vmem %s996_s9, 16  ;;  %s1286_s10 = scalar_lea.vmem %s996_s9, 32 }
  0x1c   :  { %v472_v56 = vld [vmem:[%s1687_s2 + $0x70] sm:$0xff]  ;;  %v42_v57 = vld [vmem:[%s1685_s0 + $0x78] sm:$0xff]  ;;  %v1575_v9 = vld [vmem:[%s1691_s6] ss:$0 sm:$0xff]  ;;  %s1307_s6 = smov 64   ;;  %p1283_p0 = scmp.ne.s32.totalorder %s996_s9, %s1282_s4 }
  0x1d   :  { %1150 = vmatmul.mubr.msk.f32.gmra.mrb[12].mxu1 %vm261_vm5, %v32_v37  ;;  %v473_v58 = vld [vmem:[%s1687_s2 + $0x78] sm:$0xff]  ;;  %p1287_p1 = scmp.lt.s32.totalorder %s996_s9, %s996_s9  ;;  %p1288_p2 = scmp.lt.s32.totalorder %s1286_s10, %s1282_s4 }
  0x1e   :  { %1182 = vmatmul.mubr.msk.f32.gmra.mrb[12].mxu0 %vm478_vm6, %v463_v38  ;;  %1152 = vmatprep.mubr.msk.f32.mxu1 %vm261_vm5, %v33_v39 }
  0x1f   :  { %1184 = vmatprep.mubr.msk.f32.mxu0 %vm478_vm6, %v464_v40  ;;  %p1289_p3 = por %p1288_p2, %p1287_p1 }
  0x21   :  { %1153 = vmatmul.mubr.msk.f32.gmra.mrb[14].mxu1 %vm261_vm5, %v34_v41  ;;  %p1290_p4 = pnand %p1289_p3, %p1283_p0 }
  0x22   :  { %1185 = vmatmul.mubr.msk.f32.gmra.mrb[14].mxu0 %vm478_vm6, %v465_v42  ;;  %1155 = vmatprep.mubr.msk.f32.mxu1 %vm261_vm5, %v35_v43 }
  0x23   :  { %1187 = vmatprep.mubr.msk.f32.mxu0 %vm478_vm6, %v466_v44 }
  0x25   :  { %1156 = vmatmul.mubr.msk.f32.gmra.mrb[0].mxu1 %vm261_vm5, %v36_v45 }
  0x26   :  { %1188 = vmatmul.mubr.msk.f32.gmra.mrb[16].mxu0 %vm478_vm6, %v467_v46  ;;  %1158 = vmatprep.mubr.msk.f32.mxu1 %vm261_vm5, %v37_v47 }
  0x27   :  { %1190 = vmatprep.mubr.msk.f32.mxu0 %vm478_vm6, %v468_v48 }
  0x29   :  { %1159 = vmatmul.mubr.msk.f32.gmra.mrb[2].mxu1 %vm261_vm5, %v38_v49 }
  0x2a   :  { %1191 = vmatmul.mubr.msk.f32.gmra.mrb[18].mxu0 %vm478_vm6, %v469_v50  ;;  %1161 = vmatprep.mubr.msk.f32.mxu1 %vm261_vm5, %v39_v51 }
  0x2b   :  { %1193 = vmatprep.mubr.msk.f32.mxu0 %vm478_vm6, %v470_v52 }
  0x2d   :  { %1162 = vmatmul.mubr.msk.f32.gmra.mrb[4].mxu1 %vm261_vm5, %v40_v53 }
  0x2e   :  { %1194 = vmatmul.mubr.msk.f32.gmra.mrb[20].mxu0 %vm478_vm6, %v471_v54  ;;  %1164 = vmatprep.mubr.msk.f32.mxu1 %vm261_vm5, %v41_v55 }
  0x2f   :  { %1196 = vmatprep.mubr.msk.f32.mxu0 %vm478_vm6, %v472_v56 }
  0x31   :  { %1165 = vmatmul.mubr.msk.f32.gmra.mrb[6].mxu1 %vm261_vm5, %v42_v57  ;;  %vm978_vm5 = vcmask 982912  }
  0x32   :  { %1197 = vmatmul.mubr.msk.f32.gmra.mrb[22].mxu0 %vm478_vm6, %v473_v58  ;;  %vm985_vm6 = vcmask 1048512  }
  0xd8   :  { %v1115_v59 = vpop.f32.mrb[0].mxu0 }
  0xd9   :  { %v182_v60 = vpop.f32.mrb[1].mxu0 }
  0xdd   :  { %v1118_v61 = vpop.f32.mrb[2].mxu0 }
  0xde   :  { %v192_v62 = vpop.f32.mrb[3].mxu0 }
  0xe1   :  { %v1121_v63 = vpop.f32.mrb[4].mxu0 }
  0xe2   :  { %v202_v0 = vpop.f32.mrb[5].mxu0 }
  0xe5   :  { %v1124_v1 = vpop.f32.mrb[6].mxu0 }
  0xe6   :  { %v212_v2 = vpop.f32.mrb[7].mxu0 }
  0xe8   :  { %v1145_v3 = vpop.f32.mrb[8].mxu1 }
  0xe9   :  { %v1177_v4 = vpop.f32.mrb[8].mxu0  ;;  %v385_v5 = vadd.f32 %v1145_v3, %v1115_v59  ;;  %v379_v6 = vpop.f32.mrb[9].mxu1 }
  0xea   :  { %v597_v7 = vpop.f32.mrb[9].mxu0  ;;  %v380_v8 = vadd.f32 %v379_v6, %v182_v60 }
  0xeb   :  { %v677_v10 = vadd.f32 %v1177_v4, %v385_v5 }
  0xec   :  { %v676_v11 = vadd.f32 %v597_v7, %v380_v8  ;;  %v1148_v12 = vpop.f32.mrb[10].mxu1 }
  0xed   :  { %v1180_v13 = vpop.f32.mrb[10].mxu0  ;;  %v700_v14 = vadd.f32 %v1575_v9, %v677_v10  ;;  %v395_v15 = vadd.f32 %v1148_v12, %v1118_v61  ;;  %v389_v16 = vpop.f32.mrb[11].mxu1 }
  0xee   :  { %v607_v17 = vpop.f32.mrb[11].mxu0  ;;  %v699_v18 = vadd.f32 %v1575_v9, %v676_v11  ;;  %v390_v19 = vadd.f32 %v389_v16, %v192_v62 }
  0xef   :  { %1250 = vtanh.f32 %v700_v14  ;;  %v679_v20 = vadd.f32 %v1180_v13, %v395_v15 }
  0xf0   :  { %v678_v21 = vadd.f32 %v607_v17, %v390_v19  ;;  %v1151_v22 = vpop.f32.mrb[12].mxu1  ;;  %1252 = vtanh.f32 %v699_v18 }
  0xf1   :  { %v1183_v23 = vpop.f32.mrb[12].mxu0  ;;  %v702_v24 = vadd.f32 %v1575_v9, %v679_v20  ;;  %v405_v25 = vadd.f32 %v1151_v22, %v1121_v63  ;;  %v399_v26 = vpop.f32.mrb[13].mxu1 }
  0xf2   :  { %v617_v27 = vpop.f32.mrb[13].mxu0  ;;  %v400_v28 = vadd.f32 %v399_v26, %v202_v0  ;;  %v701_v29 = vadd.f32 %v1575_v9, %v678_v21 }
  0xf3   :  { %1254 = vtanh.f32 %v702_v24  ;;  %v681_v30 = vadd.f32 %v1183_v23, %v405_v25 }
  0xf4   :  { %v680_v31 = vadd.f32 %v617_v27, %v400_v28  ;;  %v1154_v32 = vpop.f32.mrb[14].mxu1  ;;  %1256 = vtanh.f32 %v701_v29 }
  0xf5   :  { %v1186_v33 = vpop.f32.mrb[14].mxu0  ;;  %v415_v34 = vadd.f32 %v1154_v32, %v1124_v1  ;;  %v409_v35 = vpop.f32.mrb[15].mxu1  ;;  %v704_v39 = vadd.f32 %v1575_v9, %v681_v30 }
  0xf6   :  { %v627_v36 = vpop.f32.mrb[15].mxu0  ;;  %v703_v37 = vadd.f32 %v1575_v9, %v680_v31  ;;  %v410_v38 = vadd.f32 %v409_v35, %v212_v2 }
  0xf7   :  { %v683_v40 = vadd.f32 %v1186_v33, %v415_v34 }
  0xf8   :  { %1258 = vtanh.f32 %v703_v37  ;;  %v682_v41 = vadd.f32 %v627_v36, %v410_v38  ;;  %v1157_v42 = vpop.f32.mrb[0].mxu1 }
  0xf9   :  { %v1189_v43 = vpop.f32.mrb[16].mxu0  ;;  %v1583_v44 = vpop.eup %1250  ;;  %1260 = vtanh.f32 %v704_v39  ;;  %v706_v50 = vadd.f32 %v1575_v9, %v683_v40 }
  0xfa   :  { %v1231_v45 = vadd.f32 %v1189_v43, %v1157_v42  ;;  %v419_v46 = vpop.f32.mrb[1].mxu1  ;;  %v637_v47 = vpop.f32.mrb[17].mxu0  ;;  %v705_v48 = vadd.f32 %v1575_v9, %v682_v41  ;;  %749 = vrot.lane.b32.xlu0 %v1583_v44, %s1307_s6 }
  0xfb   :  { %v1232_v49 = vadd.f32 %v637_v47, %v419_v46  ;;  %v1589_v51 = vpop.eup %1252 }
  0xfc   :  { %1262 = vtanh.f32 %v705_v48  ;;  %v1160_v53 = vpop.f32.mrb[2].mxu1  ;;  %v708_v60 = vadd.f32 %v1231_v45, %v1575_v9 }
  0xfd   :  { %v707_v52 = vadd.f32 %v1232_v49, %v1575_v9  ;;  %v1192_v54 = vpop.f32.mrb[18].mxu0  ;;  %v1592_v55 = vpop.eup %1254  ;;  %1264 = vtanh.f32 %v706_v50 }
  0xfe   :  { %v1233_v56 = vadd.f32 %v1192_v54, %v1160_v53  ;;  %v429_v57 = vpop.f32.mrb[3].mxu1  ;;  %v647_v58 = vpop.f32.mrb[19].mxu0  ;;  %753 = vrot.lane.b32.xlu1 %v1592_v55, %s1307_s6  ;;  %747 = vrot.lane.b32.xlu0 %v1589_v51, %s1307_s6 }
  0xff   :  { %v1234_v59 = vadd.f32 %v647_v58, %v429_v57  ;;  %1266 = vtanh.f32 %v707_v52  ;;  %v1257_v0 = vpop.eup %1256 }
 0x100   :  { %v1163_v62 = vpop.f32.mrb[4].mxu1  ;;  %1268 = vtanh.f32 %v708_v60  ;;  %v710_v6 = vadd.f32 %v1233_v56, %v1575_v9 }
 0x101   :  { %v709_v61 = vadd.f32 %v1234_v59, %v1575_v9  ;;  %v1195_v63 = vpop.f32.mrb[20].mxu0  ;;  %v439_v2 = vpop.f32.mrb[5].mxu1 }
 0x102   :  { %v1235_v1 = vadd.f32 %v1195_v63, %v1163_v62  ;;  %v657_v3 = vpop.f32.mrb[21].mxu0  ;;  %v1259_v4 = vpop.eup %1258  ;;  %751 = vrot.lane.b32.xlu1 %v1257_v0, %s1307_s6 }
 0x103   :  { %v1236_v5 = vadd.f32 %v657_v3, %v439_v2  ;;  %755 = vrot.lane.b32.xlu0 %v1259_v4, %s1307_s6  ;;  %1270 = vtanh.f32 %v709_v61  ;;  %v1261_v11 = vpop.eup %1260 }
 0x104   :  { %v1166_v8 = vpop.f32.mrb[6].mxu1  ;;  %1272 = vtanh.f32 %v710_v6  ;;  %v712_v17 = vadd.f32 %v1235_v1, %v1575_v9 }
 0x105   :  { %v711_v7 = vadd.f32 %v1236_v5, %v1575_v9  ;;  %v1198_v10 = vpop.f32.mrb[22].mxu0  ;;  %v449_v13 = vpop.f32.mrb[7].mxu1 }
 0x106   :  { %v1237_v12 = vadd.f32 %v1198_v10, %v1166_v8  ;;  %v667_v14 = vpop.f32.mrb[23].mxu0  ;;  %v1263_v15 = vpop.eup %1262  ;;  %757 = vrot.lane.b32.xlu1 %v1261_v11, %s1307_s6 }
 0x107   :  { %v1238_v16 = vadd.f32 %v667_v14, %v449_v13  ;;  %759 = vrot.lane.b32.xlu0 %v1263_v15, %s1307_s6  ;;  %1274 = vtanh.f32 %v711_v7  ;;  %v1265_v19 = vpop.eup %1264  ;;  %v876_v13 = vlaneseq }
 0x108   :  { %1276 = vtanh.f32 %v712_v17  ;;  %v714_v21 = vadd.f32 %v1237_v12, %v1575_v9 }
 0x109   :  { %v713_v18 = vadd.f32 %v1238_v16, %v1575_v9  ;;  %v1267_v20 = vpop.eup %1266  ;;  %v1637_v14 = vand.u32 127, %v876_v13 }
 0x10a   :  { %761 = vrot.lane.b32.xlu1 %v1265_v19, %s1307_s6  ;;  %v1269_v22 = vpop.eup %1268 }
 0x10b   :  { %763 = vrot.lane.b32.xlu0 %v1267_v20, %s1307_s6  ;;  %1278 = vtanh.f32 %v713_v18  ;;  %v882_v16 = vadd.s32 4294967288, %v1637_v14 }
 0x10c   :  { %1280 = vtanh.f32 %v714_v21  ;;  %v896_v21 = vadd.s32 4294967272, %v1637_v14 }
 0x10d   :  { %v1271_v23 = vpop.eup %1270 }
 0x10e   :  { %765 = vrot.lane.b32.xlu1 %v1269_v22, %s1307_s6  ;;  %v1273_v24 = vpop.eup %1272 }
 0x10f   :  { %767 = vrot.lane.b32.xlu0 %v1271_v23, %s1307_s6 }
 0x111   :  { %v1275_v25 = vpop.eup %1274 }
 0x112   :  { %769 = vrot.lane.b32.xlu1 %v1273_v24, %s1307_s6  ;;  %v1277_v26 = vpop.eup %1276 }
 0x113   :  { %771 = vrot.lane.b32.xlu0 %v1275_v25, %s1307_s6 }
 0x115   :  { %v1279_v27 = vpop.eup %1278 }
 0x116   :  { %773 = vrot.lane.b32.xlu1 %v1277_v26, %s1307_s6  ;;  %v1281_v9 = vpop.eup %1280 }
 0x117   :  { %775 = vrot.lane.b32.xlu0 %v1279_v27, %s1307_s6 }
 0x11a   :  { %777 = vrot.lane.b32.xlu1 %v1281_v9, %s1307_s6 }
 0x16c   :  { %v750_v28 = vpop.permute.xlu0 %749 }
 0x16d   :  { %v796_v29 = vmul.f32 %v1583_v44, %v750_v28 }
 0x16f   :  { %v815_v30 = vsel %vm811_vm7, %v796_v29, 0.0 }
 0x170   :  { %v754_v31 = vpop.permute.xlu1 %753  ;;  %816 = vadd.xlane.f32.xlu1 %v815_v30  ;;  %v748_v32 = vpop.permute.xlu0 %747 }
 0x171   :  { %v795_v33 = vmul.f32 %v1589_v51, %v748_v32  ;;  %v798_v34 = vmul.f32 %v1592_v55, %v754_v31  ;;  %v917_v32 = vadd.s32 4294967248, %v1637_v14 }
 0x173   :  { %v812_v35 = vsel %vm811_vm7, %v795_v33, 0.0  ;;  %v821_v40 = vsel %vm811_vm7, %v798_v34, 0.0 }
 0x174   :  { %v752_v36 = vpop.permute.xlu1 %751  ;;  %813 = vadd.xlane.f32.xlu0 %v812_v35 }
 0x175   :  { %v756_v37 = vpop.permute.xlu0 %755  ;;  %v797_v39 = vmul.f32 %v1257_v0, %v752_v36  ;;  %v924_v36 = vadd.s32 4294967240, %v1637_v14 }
 0x176   :  { %v799_v38 = vmul.f32 %v1259_v4, %v756_v37 }
 0x177   :  { %v818_v46 = vsel %vm811_vm7, %v797_v39, 0.0 }
 0x178   :  { %v758_v41 = vpop.permute.xlu1 %757  ;;  %822 = vadd.xlane.f32.xlu0 %v821_v40  ;;  %v824_v42 = vsel %vm811_vm7, %v799_v38, 0.0 }
 0x179   :  { %825 = vadd.xlane.f32.xlu1 %v824_v42  ;;  %v760_v43 = vpop.permute.xlu0 %759  ;;  %v800_v45 = vmul.f32 %v1261_v11, %v758_v41 }
 0x17a   :  { %v801_v44 = vmul.f32 %v1263_v15, %v760_v43  ;;  %v1639_v15 = vshrl.u32 %v876_v13, 7 }
 0x17b   :  { %v827_v52 = vsel %vm811_vm7, %v800_v45, 0.0 }
 0x17c   :  { %v762_v47 = vpop.permute.xlu1 %761  ;;  %819 = vadd.xlane.f32.xlu0 %v818_v46  ;;  %v830_v48 = vsel %vm811_vm7, %v801_v44, 0.0  ;;  %v899_v28 = vsub.s32 %v896_v21, %v1639_v15  ;;  %v920_v42 = vsub.s32 %v917_v32, %v1639_v15  ;;  %v931_v44 = vadd.s32 4294967232, %v1637_v14 }
 0x17d   :  { %831 = vadd.xlane.f32.xlu1 %v830_v48  ;;  %v764_v49 = vpop.permute.xlu0 %763  ;;  %v802_v51 = vmul.f32 %v1265_v19, %v762_v47  ;;  %v889_v19 = vadd.s32 4294967280, %v1637_v14  ;;  %v927_v48 = vsub.s32 %v924_v36, %v1639_v15 }
 0x17e   :  { %v803_v50 = vmul.f32 %v1267_v20, %v764_v49  ;;  %v880_v20 = vsub.s32 %v1637_v14, %v1639_v15  ;;  %v938_v49 = vadd.s32 4294967224, %v1637_v14 }
 0x17f   :  { %v833_v58 = vsel %vm811_vm7, %v802_v51, 0.0 }
 0x180   :  { %v766_v53 = vpop.permute.xlu1 %765  ;;  %828 = vadd.xlane.f32.xlu0 %v827_v52  ;;  %v836_v54 = vsel %vm811_vm7, %v803_v50, 0.0  ;;  %v934_v52 = vsub.s32 %v931_v44, %v1639_v15 }
 0x181   :  { %837 = vadd.xlane.f32.xlu1 %v836_v54  ;;  %v768_v55 = vpop.permute.xlu0 %767  ;;  %v804_v57 = vmul.f32 %v1269_v22, %v766_v53  ;;  %v903_v22 = vadd.s32 4294967264, %v1637_v14  ;;  %v945_v54 = vadd.s32 4294967216, %v1637_v14 }
 0x182   :  { %v805_v56 = vmul.f32 %v1271_v23, %v768_v55  ;;  %v885_v23 = vsub.s32 %v882_v16, %v1639_v15  ;;  %v980_v16 = vadd.s32 4294967176, %v1637_v14 }
 0x183   :  { %v839_v0 = vsel %vm811_vm7, %v804_v57, 0.0  ;;  %v906_v29 = vsub.s32 %v903_v22, %v1639_v15  ;;  %v941_v57 = vsub.s32 %v938_v49, %v1639_v15 }
 0x184   :  { %v770_v59 = vpop.permute.xlu1 %769  ;;  %834 = vadd.xlane.f32.xlu0 %v833_v58  ;;  %v842_v60 = vsel %vm811_vm7, %v805_v56, 0.0  ;;  %v952_v58 = vadd.s32 4294967208, %v1637_v14 }
 0x185   :  { %843 = vadd.xlane.f32.xlu1 %v842_v60  ;;  %v772_v61 = vpop.permute.xlu0 %771  ;;  %v806_v63 = vmul.f32 %v1273_v24, %v770_v59 }
 0x186   :  { %v807_v62 = vmul.f32 %v1275_v25, %v772_v61 }
 0x187   :  { %v845_v6 = vsel %vm811_vm7, %v806_v63, 0.0 }
 0x188   :  { %v774_v1 = vpop.permute.xlu1 %773  ;;  %840 = vadd.xlane.f32.xlu0 %v839_v0  ;;  %v848_v2 = vsel %vm811_vm7, %v807_v62, 0.0  ;;  %v948_v62 = vsub.s32 %v945_v54, %v1639_v15  ;;  %v959_v0 = vadd.s32 4294967200, %v1637_v14 }
 0x189   :  { %849 = vadd.xlane.f32.xlu1 %v848_v2  ;;  %v776_v3 = vpop.permute.xlu0 %775  ;;  %v808_v5 = vmul.f32 %v1277_v26, %v774_v1  ;;  %v892_v26 = vsub.s32 %v889_v19, %v1639_v15  ;;  %v955_v2 = vsub.s32 %v952_v58, %v1639_v15 }
 0x18a   :  { %v809_v4 = vmul.f32 %v1279_v27, %v776_v3  ;;  %v910_v27 = vadd.s32 4294967256, %v1637_v14  ;;  %v966_v3 = vadd.s32 4294967192, %v1637_v14 }
 0x18b   :  { %v851_v11 = vsel %vm811_vm7, %v808_v5, 0.0 }
 0x18c   :  { %v778_v7 = vpop.permute.xlu1 %777  ;;  %846 = vadd.xlane.f32.xlu0 %v845_v6  ;;  %v854_v8 = vsel %vm811_vm7, %v809_v4, 0.0  ;;  %v913_v35 = vsub.s32 %v910_v27, %v1639_v15  ;;  %v969_v13 = vsub.s32 %v966_v3, %v1639_v15 }
 0x18d   :  { %855 = vadd.xlane.f32.xlu1 %v854_v8  ;;  %v810_v10 = vmul.f32 %v1281_v9, %v778_v7  ;;  %v962_v8 = vsub.s32 %v959_v0, %v1639_v15 }
 0x18f   :  { %v857_v12 = vsel %vm811_vm7, %v810_v10, 0.0 }
 0x190   :  { %852 = vadd.xlane.f32.xlu0 %v851_v11  ;;  %v973_v11 = vadd.s32 4294967184, %v1637_v14 }
 0x194   :  { %858 = vadd.xlane.f32.xlu0 %v857_v12 }
 0x1fd   :  { %v817_v18 = vpop.xlane.xlu1 %816 }
 0x1fe   :  { %v886_v30 = vrot.slane %v817_v18, %v885_v23 }
 0x201   :  { %v814_v17 = vpop.xlane.xlu0 %813 }
 0x202   :  { %v881_v9 = vrot.slane %v814_v17, %v880_v20  ;;  %v976_v20 = vsub.s32 %v973_v11, %v1639_v15 }
 0x204   :  { %v888_v37 = vsel %vm887_vm8, %v886_v30, %v881_v9 }
 0x205   :  { %v823_v24 = vpop.xlane.xlu0 %822 }
 0x206   :  { %v826_v25 = vpop.xlane.xlu1 %825  ;;  %v900_v38 = vrot.slane %v823_v24, %v899_v28  ;;  %v983_v24 = vsub.s32 %v980_v16, %v1639_v15 }
 0x207   :  { %v907_v39 = vrot.slane %v826_v25, %v906_v29 }
 0x209   :  { %v820_v31 = vpop.xlane.xlu0 %819 }
 0x20a   :  { %v893_v33 = vrot.slane %v820_v31, %v892_v26  ;;  %v832_v34 = vpop.xlane.xlu1 %831 }
 0x20b   :  { %v921_v51 = vrot.slane %v832_v34, %v920_v42 }
 0x20c   :  { %v895_v40 = vsel %vm894_vm9, %v893_v33, %v888_v37 }
 0x20d   :  { %v902_v41 = vsel %vm901_vm10, %v900_v38, %v895_v40  ;;  %v829_v43 = vpop.xlane.xlu0 %828 }
 0x20e   :  { %v909_v45 = vsel %vm908_vm11, %v907_v39, %v902_v41  ;;  %v914_v46 = vrot.slane %v829_v43, %v913_v35  ;;  %v838_v47 = vpop.xlane.xlu1 %837 }
 0x20f   :  { %v935_v61 = vrot.slane %v838_v47, %v934_v52 }
 0x210   :  { %v916_v50 = vsel %vm915_vm12, %v914_v46, %v909_v45 }
 0x211   :  { %v835_v53 = vpop.xlane.xlu0 %834  ;;  %v923_v59 = vsel %vm922_vm13, %v921_v51, %v916_v50 }
 0x212   :  { %v928_v55 = vrot.slane %v835_v53, %v927_v48  ;;  %v844_v56 = vpop.xlane.xlu1 %843 }
 0x213   :  { %v949_v7 = vrot.slane %v844_v56, %v948_v62 }
 0x214   :  { %v930_v60 = vsel %vm929_vm14, %v928_v55, %v923_v59 }
 0x215   :  { %v841_v63 = vpop.xlane.xlu0 %840  ;;  %v937_v4 = vsel %vm936_vm15, %v935_v61, %v930_v60 }
 0x216   :  { %v942_v1 = vrot.slane %v841_v63, %v941_v57  ;;  %v850_v6 = vpop.xlane.xlu1 %849 }
 0x217   :  { %v963_v19 = vrot.slane %v850_v6, %v962_v8 }
 0x218   :  { %v944_v5 = vsel %vm943_vm0, %v942_v1, %v937_v4 }
 0x219   :  { %v847_v10 = vpop.xlane.xlu0 %846  ;;  %v951_v17 = vsel %vm950_vm1, %v949_v7, %v944_v5 }
 0x21a   :  { %v956_v12 = vrot.slane %v847_v10, %v955_v2  ;;  %v856_v22 = vpop.xlane.xlu1 %855 }
 0x21b   :  { %v977_v27 = vrot.slane %v856_v22, %v976_v20 }
 0x21c   :  { %v958_v18 = vsel %vm957_vm2, %v956_v12, %v951_v17 }
 0x21d   :  { %v853_v21 = vpop.xlane.xlu0 %852  ;;  %v965_v25 = vsel %vm964_vm3, %v963_v19, %v958_v18 }
 0x21e   :  { %v970_v23 = vrot.slane %v853_v21, %v969_v13 }
 0x220   :  { %v972_v26 = vsel %vm971_vm4, %v970_v23, %v965_v25 }
 0x221   :  { %v859_v9 = vpop.xlane.xlu0 %858  ;;  %v979_v28 = vsel %vm978_vm5, %v977_v27, %v972_v26 }
 0x222   :  { %v984_v14 = vrot.slane %v859_v9, %v983_v24 }
 0x224   :  { %v986_v29 = vsel %vm985_vm6, %v984_v14, %v979_v28 }
 0x225   :  { %988 = vst [vmem:[#allocation2] sm:$0x1] %v986_v29 }
 0x226   :  { %1293 = shalt.err (!%p1290_p4)
}
 0x227   :  { %s1294_s12 = scalar_lea.hbm %s1692_s7, 16 }
 0x228   :  { %p1295_p5 = scmp.ne.s32.totalorder %s1692_s7, %s1294_s12  ;;  %p1298_p6 = scmp.lt.u32.totalorder %s1294_s12, %s1692_s7 }
 0x22a   :  { %p1300_p7 = pnand %p1298_p6, %p1295_p5 }
 0x22c   :  { %1303 = shalt.err (!%p1300_p7)
}
 0x22d   :  { %998 = dma.vmem_to_hbm [thread:$0]  %s996_s9, 16, %s1692_s7, [#allocation3]  }
 0x22e   :  { %1304 = dma.done.wait [#allocation3], 16  }
 0x22f   :  { %1305 = vsyncadd [#allocation3], 4294967280 }
 0x230   :  { %1002 = vsyncpa [#allocation3], 1 }

</bundles_post_ra>
